<compile_context>
chip_gen: v5e
topology: v5e:2x2
jax: 0.10.0
libtpu: 0.0.40
codegen_flags: <defaults>
</compile_context>

<pallas_src>
import jax
import jax.numpy as jnp
from jax.experimental import pallas as pl
from jax.experimental.pallas import tpu as pltpu

_LANE = 128
_SUBLANE = 8


def _round_up(x: int, m: int) -> int:
    return (x + m - 1) // m * m


def _vmem_limit_bytes() -> int:
    """Generation-aware scoped-VMEM limit (~3/4 of physical VMEM)."""
    try:
        cap = int(pltpu.get_tpu_info().vmem_capacity_bytes)
    except Exception:
        cap = 64 * 1024 * 1024            # conservative fallback (v7x per-core VMEM)
    return max((cap * 3) // 4, 16 * 1024 * 1024)


def _choose_tiles(B: int, S: int, H: int, emb_itemsize: int, vmem_limit: int):
    """Budget-derived (B_tile, S_tile).

    The streamed emb block costs B_tile*S_tile*H*itemsize bytes and is
    double-buffered by the pipeline; it gets ~half the scoped-VMEM limit, the
    rest covers mask / weights / labels / outputs / the f32 accumulator.
    """
    # Batch tile: multiple of 8, capped at 64 so (a) B >= 128 yields >= 2 steps on
    # the "parallel" axis (both v7x TensorCores busy) and (b) padding waste for
    # awkward B stays bounded.
    B_tile = min(64, _round_up(B, _SUBLANE))
    emb_budget = vmem_limit // 2

    def s_cap(bt):
        return emb_budget // (2 * emb_itemsize * bt * H)

    # If even a 128-token tile does not fit (huge H), shrink the batch tile.
    while B_tile > _SUBLANE and s_cap(B_tile) < _LANE:
        B_tile = max(_SUBLANE, (B_tile // 2) // _SUBLANE * _SUBLANE)

    if S <= _LANE:
        S_tile = _round_up(S, _SUBLANE)
    else:
        S_tile = min(int(s_cap(B_tile)) // _LANE * _LANE, _round_up(S, _LANE))
        S_tile = max(S_tile, _LANE)
    return B_tile, S_tile


# ----------------------------------------------------------------------------
# Fused kernel: masked mean pool -> linear head -> softmax probs + per-row NLL
# ----------------------------------------------------------------------------
def _fused_kernel(emb_ref, mask_ref, cnt_ref, w_ref, b_ref, labels_ref,   # inputs
                  probs_ref, nll_ref,                                     # outputs
                  acc_ref):                                               # scratch
    s = pl.program_id(1)

    @pl.when(s == 0)
    def _init():
        acc_ref[...] = jnp.zeros_like(acc_ref)

    # Masked pooling as a batched (1 x S_tile)·(S_tile x H) contraction on the
    # MXU, accumulated in f32 scratch (keeps VPU/XLU free; kernel stays HBM-bound
    # and avoids any block-sized elementwise intermediate).
    acc_ref[...] += jax.lax.dot_general(
        mask_ref[...], emb_ref[...],
        dimension_numbers=(((2,), (1,)), ((0,), (0,))),
        preferred_element_type=jnp.float32)                   # (B_tile, 1, H)

    @pl.when(s == pl.num_programs(1) - 1)
    def _finalize():
        pooled3 = acc_ref[...]                                 # (B_tile, 1, H) f32
        # Token counts were precomputed in the wrapper (clamped >= 1).
        pooled = pooled3[:, 0, :] * pl.reciprocal(cnt_ref[...])   # (B_tile, H)

        # Linear head on the MXU.  Padded class columns of w are zero and carry a
        # -1e30 bias baked in by the wrapper, so no iota/where mask is needed.
        logits = jnp.dot(pooled, w_ref[...],
                         preferred_element_type=jnp.float32) + b_ref[...]

        m = jnp.max(logits, axis=1, keepdims=True)
        e = jnp.exp(logits - m)
        ssum = jnp.sum(e, axis=1, keepdims=True)

        # softmax(dim=1): EUP reciprocal keeps the divide off the VPU.
        probs_ref[...] = e * pl.reciprocal(ssum, approx=True)

        # cross_entropy with soft / one-hot targets, without materializing
        # log_probs:  nll = (m + log ssum) * sum(lab) - sum(lab * logits)
        lab = labels_ref[...]
        nll = ((m + jnp.log(ssum)) * jnp.sum(lab, axis=1, keepdims=True)
               - jnp.sum(lab * logits, axis=1, keepdims=True))     # (B_tile, 1)
        # Lane-dense store (avoid a 1-lane masked vst); wrapper reads column 0.
        nll_ref[...] = jnp.broadcast_to(nll, nll_ref.shape)


# ----------------------------------------------------------------------------
# Wrapper: tiling, light padding, pallas_call
# ----------------------------------------------------------------------------
@jax.jit
def base_classifier_eval(token_emb, attention_mask, head_w, head_b, labels):
    """Returns (softmax probs (B, C), mean cross-entropy loss scalar)."""
    B, S, H = token_emb.shape
    C = head_w.shape[1]
    C_pad = _round_up(C, _LANE)

    vmem_limit = _vmem_limit_bytes()
    B_tile, S_tile = _choose_tiles(B, S, H, token_emb.dtype.itemsize, vmem_limit)
    B_pad = _round_up(B, B_tile)
    S_pad = _round_up(S, S_tile)

    # Embeddings stream through in their native dtype with full-H blocks — no
    # H padding and no dtype repack of the dominant tensor.  B/S are padded only
    # when the grid needs it; mask zeros keep the padded tokens inert.
    emb = token_emb
    if (B_pad, S_pad) != (B, S):
        emb = jnp.pad(token_emb, ((0, B_pad - B), (0, S_pad - S), (0, 0)))

    mask = jnp.zeros((B_pad, 1, S_pad), emb.dtype
                     ).at[:B, 0, :S].set(attention_mask.astype(emb.dtype))
    # Precomputed per-row token counts (clamped >= 1); padded rows get 1.
    cnt = jnp.ones((B_pad, 1), jnp.float32).at[:B, 0].set(
        jnp.maximum(attention_mask.astype(jnp.float32).sum(axis=1), 1.0))

    w = jnp.zeros((H, C_pad), jnp.float32).at[:, :C].set(head_w.astype(jnp.float32))
    # Bake the padded-class mask into the bias (padded w columns are zero).
    b = jnp.full((1, C_pad), -1e30, jnp.float32).at[:, :C].set(
        head_b.astype(jnp.float32))
    lab = jnp.zeros((B_pad, C_pad), jnp.float32).at[:B, :C].set(
        labels.astype(jnp.float32))

    grid = (B_pad // B_tile, S_pad // S_tile)

    probs_pad, nll = pl.pallas_call(
        _fused_kernel,
        out_shape=(jax.ShapeDtypeStruct((B_pad, C_pad), jnp.float32),
                   jax.ShapeDtypeStruct((B_pad, _LANE), jnp.float32)),
        grid_spec=pltpu.PrefetchScalarGridSpec(
            num_scalar_prefetch=0,
            grid=grid,
            in_specs=[
                pl.BlockSpec((B_tile, S_tile, H), lambda i, j: (i, j, 0)),
                pl.BlockSpec((B_tile, 1, S_tile), lambda i, j: (i, 0, j)),
                pl.BlockSpec((B_tile, 1), lambda i, j: (i, 0)),
                pl.BlockSpec((H, C_pad), lambda i, j: (0, 0)),
                pl.BlockSpec((1, C_pad), lambda i, j: (0, 0)),
                pl.BlockSpec((B_tile, C_pad), lambda i, j: (i, 0)),
            ],
            out_specs=(
                pl.BlockSpec((B_tile, C_pad), lambda i, j: (i, 0)),
                pl.BlockSpec((B_tile, _LANE), lambda i, j: (i, 0)),
            ),
            scratch_shapes=[
                pltpu.VMEM((B_tile, 1, H), jnp.float32),   # pooled-sum accumulator
            ]),
        compiler_params=pltpu.CompilerParams(
            dimension_semantics=("parallel", "arbitrary"),
            vmem_limit_bytes=int(vmem_limit)),
    )(emb, mask, cnt, w, b, lab)

    probs = probs_pad[:B, :C]
    loss = jnp.sum(nll[:B, 0]) / B        # batch-mean cross entropy
    return probs, loss


# ----------------------------------------------------------------------------
# Driver
# ----------------------------------------------------------------------------
if __name__ == "__main__":
    B, S, H, C, VOCAB = 2, 8, 32, 4, 50

    key = jax.random.PRNGKey(0)
    k_emb, k_ids, k_w, k_b, k_lab = jax.random.split(key, 5)

    # deterministic "parameters"
    embedding_table = jax.random.normal(k_emb, (VOCAB, H), jnp.float32) * 0.1
    head_w = jax.random.normal(k_w, (H, C), jnp.float32) * 0.1
    head_b = jax.random.normal(k_b, (1, C), jnp.float32) * 0.1

    # deterministic "batch"
    input_ids = jax.random.randint(k_ids, (B, S), 0, VOCAB)
    attention_mask = jnp.concatenate(
        [jnp.ones((B, S - 2), jnp.float32), jnp.zeros((B, 2), jnp.float32)],
        axis=1)
    label_ids = jax.random.randint(k_lab, (B,), 0, C)
    labels_onehot = jax.nn.one_hot(label_ids, C, dtype=jnp.float32)

    # glue: embedding lookup stays in plain JAX
    token_emb = embedding_table[input_ids]                      # (B, S, H) f32

    probs, loss = base_classifier_eval(token_emb, attention_mask,
                                       head_w, head_b, labels_onehot)
    probs = jax.block_until_ready(probs)
    loss = jax.block_until_ready(loss)

    # reference check (pure JAX, f32)
    pooled_ref = (token_emb * attention_mask[:, :, None]).sum(1) / jnp.maximum(
        attention_mask.sum(1, keepdims=True), 1.0)
    logits_ref = pooled_ref @ head_w + head_b
    probs_ref = jax.nn.softmax(logits_ref, axis=1)
    loss_ref = jnp.mean(
        -jnp.sum(labels_onehot * jax.nn.log_softmax(logits_ref, axis=1), axis=1))

    assert jnp.allclose(probs, probs_ref, atol=2e-3), "probs mismatch"
    assert jnp.allclose(loss, loss_ref, atol=1e-3), "loss mismatch"

    print("KERNEL_OK")
</pallas_src>

<mosaic_0001>
module attributes {stable_mosaic.version = 11 : i64} {
  func.func @_fused_kernel(%arg0: i32, %arg1: i32, %arg2: memref<8x8x32xf32, #tpu.memory_space<vmem>>, %arg3: memref<8x1x8xf32, #tpu.memory_space<vmem>>, %arg4: memref<8x1xf32, #tpu.memory_space<vmem>>, %arg5: memref<32x128xf32, #tpu.memory_space<vmem>>, %arg6: memref<1x128xf32, #tpu.memory_space<vmem>>, %arg7: memref<8x128xf32, #tpu.memory_space<vmem>>, %arg8: memref<8x128xf32, #tpu.memory_space<vmem>>, %arg9: memref<8x128xf32, #tpu.memory_space<vmem>>, %arg10: memref<8x1x32xf32, #tpu.memory_space<vmem>>) attributes {dimension_semantics = [#tpu.dimension_semantics<parallel>, #tpu.dimension_semantics<arbitrary>], iteration_bounds = array<i64: 1, 1>, scalar_prefetch = 0 : i64, scratch_operands = 1 : i64, tpu.core_type = #tpu.core_type<tc>, window_params = [{transform_indices = @transform_0, window_bounds = array<i64: 8, 8, 32>}, {transform_indices = @transform_1, window_bounds = array<i64: 8, 1, 8>}, {transform_indices = @transform_2, window_bounds = array<i64: 8, 1>}, {pipeline_mode = #tpu.pipeline_mode<synchronous>, transform_indices = @transform_3, window_bounds = array<i64: 32, 128>}, {pipeline_mode = #tpu.pipeline_mode<synchronous>, transform_indices = @transform_4, window_bounds = array<i64: 1, 128>}, {transform_indices = @transform_5, window_bounds = array<i64: 8, 128>}, {transform_indices = @transform_6, window_bounds = array<i64: 8, 128>}, {transform_indices = @transform_7, window_bounds = array<i64: 8, 128>}]} {
    %c0_i32 = arith.constant 0 : i32
    %0 = arith.cmpi eq, %arg1, %c0_i32 : i32
    %1 = arith.extui %0 : i1 to i32
    %c0_i32_0 = arith.constant 0 : i32
    %2 = arith.cmpi ne, %1, %c0_i32_0 : i32
    scf.if %2 {
      %cst_14 = arith.constant 0.000000e+00 : f32
      %12 = vector.broadcast %cst_14 : f32 to vector<8x1x32xf32>
      %c0_15 = arith.constant 0 : index
      %c0_16 = arith.constant 0 : index
      %c0_17 = arith.constant 0 : index
      %13 = vector.load %arg10[%c0_15, %c0_16, %c0_17] : memref<8x1x32xf32, #tpu.memory_space<vmem>>, vector<8x1x32xf32>
      tpu.vector_store %arg10[%c0_15, %c0_16, %c0_17], %12 {strides = array<i32>} : memref<8x1x32xf32, #tpu.memory_space<vmem>>, vector<8x1x32xf32>,
    } else {
    }
    %c0 = arith.constant 0 : index
    %c0_1 = arith.constant 0 : index
    %c0_2 = arith.constant 0 : index
    %3 = vector.load %arg10[%c0, %c0_1, %c0_2] : memref<8x1x32xf32, #tpu.memory_space<vmem>>, vector<8x1x32xf32>
    %c0_3 = arith.constant 0 : index
    %c0_4 = arith.constant 0 : index
    %c0_5 = arith.constant 0 : index
    %4 = vector.load %arg3[%c0_3, %c0_4, %c0_5] : memref<8x1x8xf32, #tpu.memory_space<vmem>>, vector<8x1x8xf32>
    %c0_6 = arith.constant 0 : index
    %c0_7 = arith.constant 0 : index
    %c0_8 = arith.constant 0 : index
    %5 = vector.load %arg2[%c0_6, %c0_7, %c0_8] : memref<8x8x32xf32, #tpu.memory_space<vmem>>, vector<8x8x32xf32>
    %cst = arith.constant dense<0.000000e+00> : vector<8x1x32xf32>
    %6 = tpu.matmul %4, %5, %cst {dimension_numbers = #tpu.dot_dimension_numbers<[2], [1], [1], [2], [0, 0, 0, 1, 1, 2], [0], [0]>} : vector<8x1x8xf32>, vector<8x8x32xf32>, vector<8x1x32xf32> -> vector<8x1x32xf32>
    %7 = arith.addf %3, %6 : vector<8x1x32xf32>
    %c0_9 = arith.constant 0 : index
    %c0_10 = arith.constant 0 : index
    %c0_11 = arith.constant 0 : index
    %8 = vector.load %arg10[%c0_9, %c0_10, %c0_11] : memref<8x1x32xf32, #tpu.memory_space<vmem>>, vector<8x1x32xf32>
    tpu.vector_store %arg10[%c0_9, %c0_10, %c0_11], %7 {strides = array<i32>} : memref<8x1x32xf32, #tpu.memory_space<vmem>>, vector<8x1x32xf32>,
    %c0_i32_12 = arith.constant 0 : i32
    %9 = arith.cmpi eq, %arg1, %c0_i32_12 : i32
    %10 = arith.extui %9 : i1 to i32
    %c0_i32_13 = arith.constant 0 : i32
    %11 = arith.cmpi ne, %10, %c0_i32_13 : i32
    scf.if %11 {
      %c0_14 = arith.constant 0 : index
      %c0_15 = arith.constant 0 : index
      %c0_16 = arith.constant 0 : index
      %12 = vector.load %arg10[%c0_14, %c0_15, %c0_16] : memref<8x1x32xf32, #tpu.memory_space<vmem>>, vector<8x1x32xf32>
      %13 = vector.shape_cast %12 : vector<8x1x32xf32> to vector<8x32xf32>
      %c0_17 = arith.constant 0 : index
      %c0_18 = arith.constant 0 : index
      %14 = vector.load %arg4[%c0_17, %c0_18] : memref<8x1xf32, #tpu.memory_space<vmem>>, vector<8x1xf32>
      %15 = tpu.reciprocal %14 : vector<8x1xf32> -> vector<8x1xf32>
      %16 = vector.broadcast %15 : vector<8x1xf32> to vector<8x32xf32>
      %17 = arith.mulf %13, %16 : vector<8x32xf32>
      %c0_19 = arith.constant 0 : index
      %c0_20 = arith.constant 0 : index
      %18 = vector.load %arg5[%c0_19, %c0_20] : memref<32x128xf32, #tpu.memory_space<vmem>>, vector<32x128xf32>
      %cst_21 = arith.constant dense<0.000000e+00> : vector<8x128xf32>
      %19 = tpu.matmul %17, %18, %cst_21 {dimension_numbers = #tpu.dot_dimension_numbers<[1], [0], [0], [1], [0, 0, 1, 1], [], []>} : vector<8x32xf32>, vector<32x128xf32>, vector<8x128xf32> -> vector<8x128xf32>
      %c0_22 = arith.constant 0 : index
      %c0_23 = arith.constant 0 : index
      %20 = vector.load %arg6[%c0_22, %c0_23] : memref<1x128xf32, #tpu.memory_space<vmem>>, vector<1x128xf32>
      %21 = vector.broadcast %20 : vector<1x128xf32> to vector<8x128xf32>
      %22 = arith.addf %19, %21 : vector<8x128xf32>
      %cst_24 = arith.constant dense<0xFF800000> : vector<8xf32>
      %23 = vector.multi_reduction <maximumf>, %22, %cst_24 [1] : vector<8x128xf32> to vector<8xf32>
      %24 = vector.shape_cast %23 : vector<8xf32> to vector<8x1xf32>
      %25 = vector.broadcast %24 : vector<8x1xf32> to vector<8x128xf32>
      %26 = arith.subf %22, %25 : vector<8x128xf32>
      %27 = math.exp %26 : vector<8x128xf32>
      %cst_25 = arith.constant dense<0.000000e+00> : vector<8xf32>
      %28 = vector.multi_reduction <add>, %27, %cst_25 [1] : vector<8x128xf32> to vector<8xf32>
      %29 = vector.shape_cast %28 : vector<8xf32> to vector<8x1xf32>
      %30 = tpu.reciprocal %29 {approx = true} : vector<8x1xf32> -> vector<8x1xf32>
      %31 = vector.broadcast %30 : vector<8x1xf32> to vector<8x128xf32>
      %32 = arith.mulf %27, %31 : vector<8x128xf32>
      %c0_26 = arith.constant 0 : index
      %c0_27 = arith.constant 0 : index
      %33 = vector.load %arg8[%c0_26, %c0_27] : memref<8x128xf32, #tpu.memory_space<vmem>>, vector<8x128xf32>
      tpu.vector_store %arg8[%c0_26, %c0_27], %32 {strides = array<i32>} : memref<8x128xf32, #tpu.memory_space<vmem>>, vector<8x128xf32>,
      %c0_28 = arith.constant 0 : index
      %c0_29 = arith.constant 0 : index
      %34 = vector.load %arg7[%c0_28, %c0_29] : memref<8x128xf32, #tpu.memory_space<vmem>>, vector<8x128xf32>
      %35 = math.log %29 : vector<8x1xf32>
      %36 = arith.addf %24, %35 : vector<8x1xf32>
      %cst_30 = arith.constant dense<0.000000e+00> : vector<8xf32>
      %37 = vector.multi_reduction <add>, %34, %cst_30 [1] : vector<8x128xf32> to vector<8xf32>
      %38 = vector.shape_cast %37 : vector<8xf32> to vector<8x1xf32>
      %39 = arith.mulf %36, %38 : vector<8x1xf32>
      %40 = arith.mulf %34, %22 : vector<8x128xf32>
      %cst_31 = arith.constant dense<0.000000e+00> : vector<8xf32>
      %41 = vector.multi_reduction <add>, %40, %cst_31 [1] : vector<8x128xf32> to vector<8xf32>
      %42 = vector.shape_cast %41 : vector<8xf32> to vector<8x1xf32>
      %43 = arith.subf %39, %42 : vector<8x1xf32>
      %44 = vector.shape_cast %43 : vector<8x1xf32> to vector<8x1xf32>
      %45 = vector.broadcast %44 : vector<8x1xf32> to vector<8x128xf32>
      %c0_32 = arith.constant 0 : index
      %c0_33 = arith.constant 0 : index
      %46 = vector.load %arg9[%c0_32, %c0_33] : memref<8x128xf32, #tpu.memory_space<vmem>>, vector<8x128xf32>
      tpu.vector_store %arg9[%c0_32, %c0_33], %45 {strides = array<i32>} : memref<8x128xf32, #tpu.memory_space<vmem>>, vector<8x128xf32>,
    } else {
    }
    return
  }
  func.func @transform_0(%arg0: i32, %arg1: i32) -> (i32, i32, i32) {
    %c0_i32 = arith.constant 0 : i32
    %c0_i32_0 = arith.constant 0 : i32
    return %arg0, %arg1, %c0_i32 : i32, i32, i32
  }
  func.func @transform_1(%arg0: i32, %arg1: i32) -> (i32, i32, i32) {
    %c0_i32 = arith.constant 0 : i32
    %c0_i32_0 = arith.constant 0 : i32
    return %arg0, %c0_i32, %arg1 : i32, i32, i32
  }
  func.func @transform_2(%arg0: i32, %arg1: i32) -> (i32, i32) {
    %c0_i32 = arith.constant 0 : i32
    %c0_i32_0 = arith.constant 0 : i32
    return %arg0, %c0_i32 : i32, i32
  }
  func.func @transform_3(%arg0: i32, %arg1: i32) -> (i32, i32) {
    %c0_i32 = arith.constant 0 : i32
    %c0_i32_0 = arith.constant 0 : i32
    %c0_i32_1 = arith.constant 0 : i32
    return %c0_i32, %c0_i32_0 : i32, i32
  }
  func.func @transform_4(%arg0: i32, %arg1: i32) -> (i32, i32) {
    %c0_i32 = arith.constant 0 : i32
    %c0_i32_0 = arith.constant 0 : i32
    %c0_i32_1 = arith.constant 0 : i32
    return %c0_i32, %c0_i32_0 : i32, i32
  }
  func.func @transform_5(%arg0: i32, %arg1: i32) -> (i32, i32) {
    %c0_i32 = arith.constant 0 : i32
    %c0_i32_0 = arith.constant 0 : i32
    return %arg0, %c0_i32 : i32, i32
  }
  func.func @transform_6(%arg0: i32, %arg1: i32) -> (i32, i32) {
    %c0_i32 = arith.constant 0 : i32
    %c0_i32_0 = arith.constant 0 : i32
    return %arg0, %c0_i32 : i32, i32
  }
  func.func @transform_7(%arg0: i32, %arg1: i32) -> (i32, i32) {
    %c0_i32 = arith.constant 0 : i32
    %c0_i32_0 = arith.constant 0 : i32
    return %arg0, %c0_i32 : i32, i32
  }
}

</mosaic_0001>

<bundles_post_ra>
// kernel: base_classifier_eval.1
= control target key start
LH: loop header
LB: loop body
LE: loop exit
PB: predicated region body
PF: predicated region fallthrough
CT: control target
= control target key end

     0   :  { %vm62_vm0 = vcmask 64512   ;;  %vm29_vm1 = vcmask 253952   ;;  %v424_v3 = vmov 0   ;;  %v425_v4 = vmov 0.0   ;;  %s565_s0 = inlined_call_operand.vmem [shape: f32[8,8,32], index: 0, kind: input, shape index: {}]   ;;  %s566_s1 = inlined_call_operand.vmem [shape: f32[8,1,8], index: 1, kind: input, shape index: {}]   ;;  %s567_s2 = inlined_call_operand.vmem [shape: f32[8,1], index: 2, kind: input, shape index: {}]   ;;  %s568_s4 = inlined_call_operand.vmem [shape: f32[1,128], index: 4, kind: input, shape index: {}]   ;;  %s569_s3 = inlined_call_operand.vmem [shape: f32[32,128], index: 3, kind: input, shape index: {}]   ;;  %s570_s5 = inlined_call_operand.vmem [shape: f32[8,128], index: 5, kind: input, shape index: {}]   ;;  %s571_s6 = inlined_call_operand.vmem [shape: f32[8,128], index: 6, kind: output, shape index: {0}]   ;;  %s572_s7 = inlined_call_operand.vmem [shape: f32[8,128], index: 7, kind: output, shape index: {1}]  }
   0x1   :  { %v56_v0 = vld [vmem:[%s565_s0 + $0x10] sm:$0xff]  ;;  %v57_v1 = vld [vmem:[%s565_s0 + $0x18] sm:$0xff]  ;;  %v48_v2 = vld [vmem:[%s566_s1 + $0x2] sm:$0x1]  ;;  %414 = vset.pattern.permute.xlu0 %v424_v3  ;;  %30 = vst.msk [vmem:[#allocation2] sm:$0x1] %vm29_vm1, %v425_v4 }
   0x2   :  { %127 = vmatpush.msra.mxu2 %v56_v0  ;;  %150 = vmatpush.msra.mxu3 %v57_v1  ;;  %v49_v5 = vld [vmem:[%s566_s1 + $0x3] sm:$0x1]  ;;  %v60_v6 = vld [vmem:[%s565_s0 + $0x30] sm:$0xff]  ;;  %v61_v7 = vld [vmem:[%s565_s0 + $0x38] sm:$0xff]  ;;  %31 = vst.msk [vmem:[#allocation2 + $0x1] sm:$0x1] %vm29_vm1, %v425_v4 }
   0x3   :  { %405 = vmatmul.msk.f32.vlgmr.msra.gmra.mxu2 %vm62_vm0, %v48_v2  ;;  %406 = vmatmul.msk.f32.vlgmr.msra.gmra.mxu3 %vm62_vm0, %v49_v5  ;;  %v54_v8 = vld [vmem:[%s565_s0] sm:$0xff]  ;;  %v55_v9 = vld [vmem:[%s565_s0 + $0x8] sm:$0xff]  ;;  %32 = vst.msk [vmem:[#allocation2 + $0x2] sm:$0x1] %vm29_vm1, %v425_v4  ;;  %v321_v29 = vld [vmem:[%s569_s3 + $0x18] sm:$0xff]  ;;  %vm350_vm6 = vcmask 261120  }
   0x4   :  { %v46_v10 = vld [vmem:[%s566_s1] sm:$0x1]  ;;  %219 = vmatpush.msrb.mxu2 %v60_v6  ;;  %242 = vmatpush.msrb.mxu3 %v61_v7  ;;  %v47_v11 = vld [vmem:[%s566_s1 + $0x1] sm:$0x1]  ;;  %v59_v13 = vld [vmem:[%s565_s0 + $0x28] sm:$0xff] }
   0x5   :  { %v58_v12 = vld [vmem:[%s565_s0 + $0x20] sm:$0xff]  ;;  %33 = vst.msk [vmem:[#allocation2 + $0x3] sm:$0x1] %vm29_vm1, %v425_v4  ;;  %81 = vmatpush.msra.mxu0 %v54_v8  ;;  %104 = vmatpush.msra.mxu1 %v55_v9  ;;  %v320_v30 = vld [vmem:[%s569_s3 + $0x10] sm:$0xff]  ;;  %v319_v31 = vld [vmem:[%s569_s3 + $0x8] sm:$0xff] }
   0x6   :  { %403 = vmatmul.msk.f32.vlgmr.msra.gmra.mxu0 %vm62_vm0, %v46_v10  ;;  %404 = vmatmul.msk.f32.vlgmr.msra.gmra.mxu1 %vm62_vm0, %v47_v11  ;;  %v275_v14 = vld [vmem:[%s567_s2] sm:$0xff]  ;;  %34 = vst.msk [vmem:[#allocation2 + $0x4] sm:$0x1] %vm29_vm1, %v425_v4 }
   0x7   :  { %173 = vmatpush.msrb.mxu0 %v58_v12  ;;  %196 = vmatpush.msrb.mxu1 %v59_v13  ;;  %416 = vrcp.f32 %v275_v14  ;;  %35 = vst.msk [vmem:[#allocation2 + $0x5] sm:$0x1] %vm29_vm1, %v425_v4  ;;  %v52_v15 = vld [vmem:[%s566_s1 + $0x6] sm:$0x1]  ;;  %v53_v16 = vld [vmem:[%s566_s1 + $0x7] sm:$0x1]  ;;  %vm281_vm2 = vweird.f32 %v275_v14 }
   0x8   :  { %36 = vst.msk [vmem:[#allocation2 + $0x6] sm:$0x1] %vm29_vm1, %v425_v4  ;;  %v50_v17 = vld [vmem:[%s566_s1 + $0x4] sm:$0x1]  ;;  %v51_v18 = vld [vmem:[%s566_s1 + $0x5] sm:$0x1] }
   0x9   :  { %37 = vst.msk [vmem:[#allocation2 + $0x7] sm:$0x1] %vm29_vm1, %v425_v4  ;;  %v287_v21 = vand.u32 2147483648, %v275_v14  ;;  %v285_v23 = vand.u32 2147483647, %v275_v14  ;;  %365 = vmatpush.msra.mxu0 %v321_v29  ;;  %v318_v34 = vld [vmem:[%s569_s3] sm:$0xff] }
   0xa   :  { %v38_v32 = vld [vmem:[#allocation2] sm:$0x1]  ;;  %v39_v33 = vld [vmem:[#allocation2 + $0x1] sm:$0x1]  ;;  %v40_v39 = vld [vmem:[#allocation2 + $0x2] sm:$0x1] }
   0xb   :  { %409 = vmatmul.msk.f32.vlgmr.msrb.gmra.mxu2 %vm62_vm0, %v52_v15  ;;  %410 = vmatmul.msk.f32.vlgmr.msrb.gmra.mxu3 %vm62_vm0, %v53_v16  ;;  %v288_v25 = vor.u32 1.1754944e-38, %v287_v21  ;;  %vm286_vm5 = vcmp.eq.f32.partialorder %v285_v23, 8.507059e+37  ;;  %v383_v21 = vld [vmem:[%s570_s5] sm:$0xff] }
   0xc   :  { %366 = vmatpush.msra.mxu0 %v320_v30  ;;  %v41_v40 = vld [vmem:[#allocation2 + $0x3] sm:$0x1] }
   0xd   :  { %v417_v19 = vpop.eup %416  ;;  %v42_v46 = vld [vmem:[#allocation2 + $0x4] sm:$0x1] }
   0xe   :  { %407 = vmatmul.msk.f32.vlgmr.msrb.gmra.mxu0 %vm62_vm0, %v50_v17  ;;  %408 = vmatmul.msk.f32.vlgmr.msrb.gmra.mxu1 %vm62_vm0, %v51_v18  ;;  %v277_v20 = vmul.f32 %v417_v19, %v275_v14  ;;  %vm282_vm3 = vweird.f32 %v417_v19  ;;  %v43_v50 = vld [vmem:[#allocation2 + $0x5] sm:$0x1] }
   0xf   :  { %vm283_vm4 = vmor %vm281_vm2, %vm282_vm3  ;;  %367 = vmatpush.msra.mxu0 %v319_v31  ;;  %v44_v59 = vld [vmem:[#allocation2 + $0x6] sm:$0x1] }
  0x10   :  { %v278_v22 = vsub.f32 1.0, %v277_v20  ;;  %v45_v62 = vld [vmem:[#allocation2 + $0x7] sm:$0x1] }
  0x11   :  { %368 = vmatpush.msra.mxu0 %v318_v34 }
  0x12   :  { %v279_v24 = vmul.f32 %v417_v19, %v278_v22 }
  0x14   :  { %v280_v26 = vadd.f32 %v417_v19, %v279_v24 }
  0x16   :  { %v284_v27 = vsel %vm283_vm4, %v417_v19, %v280_v26  ;;  %v415_v19 = vld [vmem:[%s568_s4] ss:$0 sm:$0xff] }
  0x17   :  { %v289_v28 = vsel %vm286_vm5, %v288_v25, %v284_v27 }
  0x18   :  { %292 = vperm.xlu0 %414, %v289_v28  }
  0x83   :  { %v83_v35 = vpop.f32.mrf.mxu0  ;;  %v106_v36 = vpop.f32.mrf.mxu1 }
  0x84   :  { %v247_v37 = vadd.f32 %v83_v35, %v38_v32  ;;  %v248_v38 = vadd.f32 %v106_v36, %v39_v33 }
  0x86   :  { %256 = vst.msk [vmem:[#allocation2] sm:$0x1] %vm29_vm1, %v247_v37  ;;  %v129_v41 = vpop.f32.mrf.mxu2  ;;  %v152_v42 = vpop.f32.mrf.mxu3 }
  0x87   :  { %257 = vst.msk [vmem:[#allocation2 + $0x1] sm:$0x1] %vm29_vm1, %v248_v38  ;;  %v249_v43 = vadd.f32 %v129_v41, %v40_v39  ;;  %v250_v44 = vadd.f32 %v152_v42, %v41_v40 }
  0x89   :  { %258 = vst.msk [vmem:[#allocation2 + $0x2] sm:$0x1] %vm29_vm1, %v249_v43 }
  0x8a   :  { %259 = vst.msk [vmem:[#allocation2 + $0x3] sm:$0x1] %vm29_vm1, %v250_v44  ;;  %v293_v45 = vpop.permute.xlu0 %292 }
  0x8b   :  { %v294_v47 = vperm.slane %v293_v45, 0  ;;  %v295_v48 = vperm.slane %v293_v45, 1  ;;  %v175_v49 = vpop.f32.mrf.mxu0  ;;  %v198_v51 = vpop.f32.mrf.mxu1  ;;  %v296_v53 = vperm.slane %v293_v45, 2  ;;  %v297_v56 = vperm.slane %v293_v45, 3 }
  0x8c   :  { %v251_v54 = vadd.f32 %v175_v49, %v42_v46  ;;  %v252_v58 = vadd.f32 %v198_v51, %v43_v50  ;;  %v298_v6 = vperm.slane %v293_v45, 4  ;;  %v299_v7 = vperm.slane %v293_v45, 5 }
  0x8d   :  { %v267_v52 = vld [vmem:[#allocation2] sm:$0x1]  ;;  %v300_v10 = vperm.slane %v293_v45, 6  ;;  %v301_v12 = vperm.slane %v293_v45, 7 }
  0x8e   :  { %v268_v55 = vld [vmem:[#allocation2 + $0x1] sm:$0x1]  ;;  %v310_v57 = vmul.f32 %v294_v47, %v267_v52  ;;  %v221_v60 = vpop.f32.mrf.mxu2  ;;  %260 = vst.msk [vmem:[#allocation2 + $0x4] sm:$0x1] %vm29_vm1, %v251_v54  ;;  %v244_v63 = vpop.f32.mrf.mxu3 }
  0x8f   :  { %v311_v61 = vmul.f32 %v295_v48, %v268_v55  ;;  %v253_v3 = vadd.f32 %v221_v60, %v44_v59  ;;  %261 = vst.msk [vmem:[#allocation2 + $0x5] sm:$0x1] %vm29_vm1, %v252_v58  ;;  %v254_v5 = vadd.f32 %v244_v63, %v45_v62 }
  0x90   :  { %v269_v0 = vld [vmem:[#allocation2 + $0x2] sm:$0x1]  ;;  %334 = vst [vmem:[#allocation1] ss:$9 sm:$0xff] %v310_v57 }
  0x91   :  { %v270_v1 = vld [vmem:[#allocation2 + $0x3] sm:$0x1]  ;;  %v312_v2 = vmul.f32 %v296_v53, %v269_v0  ;;  %336 = vst [vmem:[#allocation1 + $0x1] ss:$9 sm:$0xff] %v311_v61 }
  0x92   :  { %v313_v4 = vmul.f32 %v297_v56, %v270_v1  ;;  %262 = vst.msk [vmem:[#allocation2 + $0x6] sm:$0x1] %vm29_vm1, %v253_v3 }
  0x93   :  { %338 = vst [vmem:[#allocation1 + $0x2] ss:$9 sm:$0xff] %v312_v2 }
  0x94   :  { %340 = vst [vmem:[#allocation1 + $0x3] ss:$9 sm:$0xff] %v313_v4 }
  0x95   :  { %v271_v8 = vld [vmem:[#allocation2 + $0x4] sm:$0x1]  ;;  %263 = vst.msk [vmem:[#allocation2 + $0x7] sm:$0x1] %vm29_vm1, %v254_v5 }
  0x96   :  { %v314_v9 = vmul.f32 %v298_v6, %v271_v8  ;;  %v272_v11 = vld [vmem:[#allocation2 + $0x5] sm:$0x1] }
  0x97   :  { %v315_v13 = vmul.f32 %v299_v7, %v272_v11 }
  0x98   :  { %342 = vst [vmem:[#allocation1 + $0x4] ss:$9 sm:$0xff] %v314_v9 }
  0x99   :  { %v273_v14 = vld [vmem:[#allocation2 + $0x6] sm:$0x1]  ;;  %344 = vst [vmem:[#allocation1 + $0x5] ss:$9 sm:$0xff] %v315_v13 }
  0x9a   :  { %v316_v16 = vmul.f32 %v300_v10, %v273_v14 }
  0x9c   :  { %v274_v15 = vld [vmem:[#allocation2 + $0x7] sm:$0x1]  ;;  %346 = vst [vmem:[#allocation1 + $0x6] ss:$9 sm:$0xff] %v316_v16 }
  0x9d   :  { %v317_v17 = vmul.f32 %v301_v12, %v274_v15 }
  0x9f   :  { %348 = vst [vmem:[#allocation1 + $0x7] ss:$9 sm:$0xff] %v317_v17 }
  0xa6   :  { %v349_v18 = vld [vmem:[#allocation1] sm:$0xff] }
  0xa7   :  { %411 = vmatmul.msk.f32.vlgmr.msra.gmra.mxu0 %vm350_vm6, %v349_v18 }
 0x124   :  { %v370_v20 = vpop.f32.mrf.mxu0 }
 0x125   :  { %v371_v22 = vadd.f32 %v415_v19, %v370_v20 }
 0x127   :  { %373 = vmax.xlane.f32.xlu0 %v371_v22  ;;  %v390_v23 = vmul.f32 %v383_v21, %v371_v22 }
 0x129   :  { %391 = vadd.xlane.f32.xlu2 %v390_v23 }
 0x19a   :  { %v374_v24 = vpop.xlane.xlu0 %373 }
 0x19b   :  { %v375_v25 = vsub.f32 %v371_v22, %v374_v24 }
 0x19c   :  { %v392_v36 = vpop.xlane.xlu2 %391 }
 0x19d   :  { %v376_v26 = vmul.f32 1.442695, %v375_v25 }
 0x19f   :  { %418 = vpow2.f32 %v376_v26 }
 0x1a5   :  { %v419_v27 = vpop.eup %418 }
 0x1a6   :  { %378 = vadd.xlane.f32.xlu1 %v419_v27 }
 0x1ae   :  { %387 = vadd.xlane.f32.xlu1 %v383_v21 }
 0x219   :  { %v379_v28 = vpop.xlane.xlu1 %378 }
 0x21a   :  { %420 = vrcp.f32 %v379_v28 }
 0x21b   :  { %422 = vlog2.f32 %v379_v28 }
 0x220   :  { %v421_v29 = vpop.eup %420 }
 0x221   :  { %v423_v30 = vpop.eup %422  ;;  %v381_v31 = vmul.f32 %v421_v29, %v419_v27  ;;  %v388_v33 = vpop.xlane.xlu1 %387 }
 0x222   :  { %v385_v32 = vmul.f32 0.6931472, %v423_v30 }
 0x223   :  { %382 = vst [vmem:[%s571_s6] sm:$0xff] %v381_v31 }
 0x224   :  { %v386_v34 = vadd.f32 %v385_v32, %v374_v24 }
 0x226   :  { %v389_v35 = vmul.f32 %v388_v33, %v386_v34 }
 0x228   :  { %v393_v37 = vsub.f32 %v389_v35, %v392_v36 }
 0x22a   :  { %394 = vst [vmem:[%s572_s7] sm:$0xff] %v393_v37 }

</bundles_post_ra>
